<compile_context>
chip_gen: v7x
topology: tpu7x:2x2x1
jax: 0.10.0
libtpu: 0.0.40
codegen_flags: <defaults>
</compile_context>

<pallas_src>
import functools

import jax
import jax.numpy as jnp
from jax.experimental import pallas as pl
from jax.experimental.pallas import tpu as pltpu


def multitask_mlp_kernel(
    x_ref,                      # (TB, D)         bf16
    w1_ref, b1_ref,             # (D, H1)  bf16,  (1, H1)    f32
    wf_ref, bf_ref,             # (H1, C+H2) bf16,(1, C+H2)  f32   [cls | fc2]
    wr_ref, br_ref,             # (1, H2)  f32,   (1, 1)     f32   (reg head)
    out_ref,                    # (TB, OUT_PAD)   f32   lane-dense slab
    *, num_classes,
):
    C = num_classes
    x = x_ref[...]

    # fc1 -> relu  (dropout1 identity at inference); bf16 matmul, f32 accum.
    h1 = jnp.dot(x, w1_ref[...], preferred_element_type=jnp.float32) + b1_ref[...]
    h1 = jnp.maximum(h1, 0.0)

    # fused [cls | fc2] matmul on h1: one MXU push instead of two narrow ones.
    fused = (
        jnp.dot(h1.astype(jnp.bfloat16), wf_ref[...],
                preferred_element_type=jnp.float32)
        + bf_ref[...]
    )
    cls = fused[:, :C]                       # classification logits (no relu)
    h2 = jnp.maximum(fused[:, C:], 0.0)      # fc2 -> relu (dropout2 identity)

    # regression head (out_features=1): VPU multiply + XLU lane reduction.
    reg = jnp.sum(h2 * wr_ref[...], axis=-1, keepdims=True) + br_ref[...]

    # single lane-dense output slab: [reg | cls | zero pad] -> one full vst.
    tb = out_ref.shape[0]
    pad_w = out_ref.shape[1] - (1 + C)
    out_ref[...] = jnp.concatenate(
        [reg, cls, jnp.zeros((tb, pad_w), jnp.float32)], axis=-1
    )


def multitask_mlp(x, params, *, block_batch=None):
    """params: dict with w1,b1,wc,bc,w2,b2,wr,br; weights stored as (in, out)."""
    B, D = x.shape
    H1 = params["w1"].shape[1]
    H2 = params["w2"].shape[1]
    C = params["wc"].shape[1]

    # Whole batch in one step when small; otherwise the largest aligned row
    # tile dividing B (fills MXU rows, amortizes per-step overhead).
    if block_batch is None:
        if B <= 512:
            block_batch = B
        else:
            block_batch = B
            for cand in (512, 256):
                if B % cand == 0:
                    block_batch = cand
                    break
    assert B % block_batch == 0

    # Lane-dense output slab width (>=128, room for 1 reg lane + C cls lanes).
    OUT_PAD = max(128, pl.cdiv(1 + C, 128) * 128)

    # bf16 matmul operands; f32 biases / reg-head row.
    x_bf = x.astype(jnp.bfloat16)
    w1 = params["w1"].astype(jnp.bfloat16)
    wf = jnp.concatenate([params["wc"], params["w2"]], axis=1).astype(jnp.bfloat16)
    b1 = params["b1"].reshape(1, H1).astype(jnp.float32)
    bf = jnp.concatenate([params["bc"], params["b2"]]).reshape(1, C + H2).astype(jnp.float32)
    wr = params["wr"].reshape(1, H2).astype(jnp.float32)
    br = params["br"].reshape(1, 1).astype(jnp.float32)

    grid = (B // block_batch,)

    def const(shape):
        # full-array block, same for every grid step (stays resident in VMEM)
        return pl.BlockSpec(shape, lambda i: (0, 0))

    kernel = functools.partial(multitask_mlp_kernel, num_classes=C)

    slab = pl.pallas_call(
        kernel,
        out_shape=jax.ShapeDtypeStruct((B, OUT_PAD), jnp.float32),
        grid_spec=pltpu.PrefetchScalarGridSpec(
            num_scalar_prefetch=0,
            grid=grid,
            in_specs=[
                pl.BlockSpec((block_batch, D), lambda i: (i, 0)),
                const((D, H1)), const((1, H1)),
                const((H1, C + H2)), const((1, C + H2)),
                const((1, H2)), const((1, 1)),
            ],
            out_specs=pl.BlockSpec((block_batch, OUT_PAD), lambda i: (i, 0)),
        ),
        compiler_params=pltpu.CompilerParams(
            dimension_semantics=("parallel",),
        ),
    )(x_bf, w1, b1, wf, bf, wr, br)

    reg_out = slab[:, 0]            # matches .flatten() of the (B, 1) output
    cls_out = slab[:, 1:1 + C]
    return reg_out, cls_out


def init_params(key, input_size, hidden_size_1, hidden_size_2, output_size):
    """Deterministic synthetic init. Weights stored as (in_features, out_features)."""
    ks = jax.random.split(key, 8)

    def linear(kw, kb, fan_in, fan_out):
        bound = 1.0 / jnp.sqrt(fan_in)
        w = jax.random.uniform(kw, (fan_in, fan_out), jnp.float32, -bound, bound)
        b = jax.random.uniform(kb, (fan_out,), jnp.float32, -bound, bound)
        return w, b

    w1, b1 = linear(ks[0], ks[1], input_size, hidden_size_1)
    w2, b2 = linear(ks[2], ks[3], hidden_size_1, hidden_size_2)
    wc, bc = linear(ks[4], ks[5], hidden_size_1, output_size)
    wr, br = linear(ks[6], ks[7], hidden_size_2, 1)
    return dict(w1=w1, b1=b1, w2=w2, b2=b2, wc=wc, bc=bc, wr=wr, br=br)


def reference_forward(x, p):
    h1 = jnp.maximum(x @ p["w1"] + p["b1"], 0.0)
    cls_out = h1 @ p["wc"] + p["bc"]
    h2 = jnp.maximum(h1 @ p["w2"] + p["b2"], 0.0)
    reg_out = (h2 @ p["wr"] + p["br"]).reshape(-1)
    return reg_out, cls_out


if __name__ == "__main__":
    # Small shapes consistent with the module's forward
    batch, input_size = 16, 32
    hidden_size_1, hidden_size_2, output_size = 64, 32, 4
    dropout = 0.5  # inference: identity, not applied

    key = jax.random.PRNGKey(0)
    kx, kp = jax.random.split(key)
    x = jax.random.normal(kx, (batch, input_size), jnp.float32)
    params = init_params(kp, input_size, hidden_size_1, hidden_size_2, output_size)

    reg_out, cls_out = multitask_mlp(x, params)
    jax.block_until_ready((reg_out, cls_out))

    # sanity check against pure-JAX f32 reference (loosened for bf16 matmuls)
    reg_ref, cls_ref = reference_forward(x, params)
    assert reg_out.shape == (batch,)
    assert cls_out.shape == (batch, output_size)
    assert jnp.allclose(reg_out, reg_ref, atol=3e-2, rtol=3e-2)
    assert jnp.allclose(cls_out, cls_ref, atol=3e-2, rtol=3e-2)

    print("KERNEL_OK")
</pallas_src>

<mosaic_0001>
module attributes {stable_mosaic.version = 11 : i64} {
  func.func @multitask_mlp_kernel(%arg0: i32, %arg1: memref<16x32xbf16, #tpu.memory_space<vmem>>, %arg2: memref<32x64xbf16, #tpu.memory_space<vmem>>, %arg3: memref<1x64xf32, #tpu.memory_space<vmem>>, %arg4: memref<64x36xbf16, #tpu.memory_space<vmem>>, %arg5: memref<1x36xf32, #tpu.memory_space<vmem>>, %arg6: memref<1x32xf32, #tpu.memory_space<vmem>>, %arg7: memref<1x1xf32, #tpu.memory_space<vmem>>, %arg8: memref<16x128xf32, #tpu.memory_space<vmem>>) attributes {dimension_semantics = [#tpu.dimension_semantics<parallel>], iteration_bounds = array<i64: 1>, scalar_prefetch = 0 : i64, scratch_operands = 0 : i64, tpu.core_type = #tpu.core_type<tc>, window_params = [{transform_indices = @transform_0, window_bounds = array<i64: 16, 32>}, {pipeline_mode = #tpu.pipeline_mode<synchronous>, transform_indices = @transform_1, window_bounds = array<i64: 32, 64>}, {pipeline_mode = #tpu.pipeline_mode<synchronous>, transform_indices = @transform_2, window_bounds = array<i64: 1, 64>}, {pipeline_mode = #tpu.pipeline_mode<synchronous>, transform_indices = @transform_3, window_bounds = array<i64: 64, 36>}, {pipeline_mode = #tpu.pipeline_mode<synchronous>, transform_indices = @transform_4, window_bounds = array<i64: 1, 36>}, {pipeline_mode = #tpu.pipeline_mode<synchronous>, transform_indices = @transform_5, window_bounds = array<i64: 1, 32>}, {pipeline_mode = #tpu.pipeline_mode<synchronous>, transform_indices = @transform_6, window_bounds = array<i64: 1, 1>}, {transform_indices = @transform_7, window_bounds = array<i64: 16, 128>}]} {
    %c0 = arith.constant 0 : index
    %c0_0 = arith.constant 0 : index
    %0 = vector.load %arg1[%c0, %c0_0] : memref<16x32xbf16, #tpu.memory_space<vmem>>, vector<16x32xbf16>
    %c0_1 = arith.constant 0 : index
    %c0_2 = arith.constant 0 : index
    %1 = vector.load %arg2[%c0_1, %c0_2] : memref<32x64xbf16, #tpu.memory_space<vmem>>, vector<32x64xbf16>
    %cst = arith.constant dense<0.000000e+00> : vector<16x64xf32>
    %2 = tpu.matmul %0, %1, %cst {dimension_numbers = #tpu.dot_dimension_numbers<[1], [0], [0], [1], [0, 0, 1, 1], [], []>} : vector<16x32xbf16>, vector<32x64xbf16>, vector<16x64xf32> -> vector<16x64xf32>
    %c0_3 = arith.constant 0 : index
    %c0_4 = arith.constant 0 : index
    %3 = vector.load %arg3[%c0_3, %c0_4] : memref<1x64xf32, #tpu.memory_space<vmem>>, vector<1x64xf32>
    %4 = vector.broadcast %3 : vector<1x64xf32> to vector<16x64xf32>
    %5 = arith.addf %2, %4 : vector<16x64xf32>
    %cst_5 = arith.constant 0.000000e+00 : f32
    %6 = vector.broadcast %cst_5 : f32 to vector<16x64xf32>
    %7 = arith.maximumf %5, %6 : vector<16x64xf32>
    %8 = arith.truncf %7 : vector<16x64xf32> to vector<16x64xbf16>
    %c0_6 = arith.constant 0 : index
    %c0_7 = arith.constant 0 : index
    %9 = vector.load %arg4[%c0_6, %c0_7] : memref<64x36xbf16, #tpu.memory_space<vmem>>, vector<64x36xbf16>
    %cst_8 = arith.constant dense<0.000000e+00> : vector<16x36xf32>
    %10 = tpu.matmul %8, %9, %cst_8 {dimension_numbers = #tpu.dot_dimension_numbers<[1], [0], [0], [1], [0, 0, 1, 1], [], []>} : vector<16x64xbf16>, vector<64x36xbf16>, vector<16x36xf32> -> vector<16x36xf32>
    %c0_9 = arith.constant 0 : index
    %c0_10 = arith.constant 0 : index
    %11 = vector.load %arg5[%c0_9, %c0_10] : memref<1x36xf32, #tpu.memory_space<vmem>>, vector<1x36xf32>
    %12 = vector.broadcast %11 : vector<1x36xf32> to vector<16x36xf32>
    %13 = arith.addf %10, %12 : vector<16x36xf32>
    %14 = vector.extract_strided_slice %13 {offsets = [0, 0], sizes = [16, 4], strides = [1, 1]} : vector<16x36xf32> to vector<16x4xf32>
    %15 = vector.extract_strided_slice %13 {offsets = [0, 4], sizes = [16, 32], strides = [1, 1]} : vector<16x36xf32> to vector<16x32xf32>
    %cst_11 = arith.constant 0.000000e+00 : f32
    %16 = vector.broadcast %cst_11 : f32 to vector<16x32xf32>
    %17 = arith.maximumf %15, %16 : vector<16x32xf32>
    %c0_12 = arith.constant 0 : index
    %c0_13 = arith.constant 0 : index
    %18 = vector.load %arg6[%c0_12, %c0_13] : memref<1x32xf32, #tpu.memory_space<vmem>>, vector<1x32xf32>
    %19 = vector.broadcast %18 : vector<1x32xf32> to vector<16x32xf32>
    %20 = arith.mulf %17, %19 : vector<16x32xf32>
    %cst_14 = arith.constant dense<0.000000e+00> : vector<16xf32>
    %21 = vector.multi_reduction <add>, %20, %cst_14 [1] : vector<16x32xf32> to vector<16xf32>
    %22 = vector.shape_cast %21 : vector<16xf32> to vector<16x1xf32>
    %c0_15 = arith.constant 0 : index
    %c0_16 = arith.constant 0 : index
    %23 = vector.load %arg7[%c0_15, %c0_16] : memref<1x1xf32, #tpu.memory_space<vmem>>, vector<1x1xf32>
    %24 = vector.broadcast %23 : vector<1x1xf32> to vector<16x1xf32>
    %25 = arith.addf %22, %24 : vector<16x1xf32>
    %cst_17 = arith.constant 0.000000e+00 : f32
    %26 = vector.broadcast %cst_17 : f32 to vector<16x123xf32>
    %27 = tpu.concatenate %25, %14, %26 in 1 : vector<16x1xf32>, vector<16x4xf32>, vector<16x123xf32> -> vector<16x128xf32>
    %c0_18 = arith.constant 0 : index
    %c0_19 = arith.constant 0 : index
    %28 = vector.load %arg8[%c0_18, %c0_19] : memref<16x128xf32, #tpu.memory_space<vmem>>, vector<16x128xf32>
    tpu.vector_store %arg8[%c0_18, %c0_19], %27 {strides = array<i32>} : memref<16x128xf32, #tpu.memory_space<vmem>>, vector<16x128xf32>,
    return
  }
  func.func @transform_0(%arg0: i32) -> (i32, i32) {
    %c0_i32 = arith.constant 0 : i32
    %c0_i32_0 = arith.constant 0 : i32
    return %arg0, %c0_i32 : i32, i32
  }
  func.func @transform_1(%arg0: i32) -> (i32, i32) {
    %c0_i32 = arith.constant 0 : i32
    %c0_i32_0 = arith.constant 0 : i32
    %c0_i32_1 = arith.constant 0 : i32
    return %c0_i32, %c0_i32_0 : i32, i32
  }
  func.func @transform_2(%arg0: i32) -> (i32, i32) {
    %c0_i32 = arith.constant 0 : i32
    %c0_i32_0 = arith.constant 0 : i32
    %c0_i32_1 = arith.constant 0 : i32
    return %c0_i32, %c0_i32_0 : i32, i32
  }
  func.func @transform_3(%arg0: i32) -> (i32, i32) {
    %c0_i32 = arith.constant 0 : i32
    %c0_i32_0 = arith.constant 0 : i32
    %c0_i32_1 = arith.constant 0 : i32
    return %c0_i32, %c0_i32_0 : i32, i32
  }
  func.func @transform_4(%arg0: i32) -> (i32, i32) {
    %c0_i32 = arith.constant 0 : i32
    %c0_i32_0 = arith.constant 0 : i32
    %c0_i32_1 = arith.constant 0 : i32
    return %c0_i32, %c0_i32_0 : i32, i32
  }
  func.func @transform_5(%arg0: i32) -> (i32, i32) {
    %c0_i32 = arith.constant 0 : i32
    %c0_i32_0 = arith.constant 0 : i32
    %c0_i32_1 = arith.constant 0 : i32
    return %c0_i32, %c0_i32_0 : i32, i32
  }
  func.func @transform_6(%arg0: i32) -> (i32, i32) {
    %c0_i32 = arith.constant 0 : i32
    %c0_i32_0 = arith.constant 0 : i32
    %c0_i32_1 = arith.constant 0 : i32
    return %c0_i32, %c0_i32_0 : i32, i32
  }
  func.func @transform_7(%arg0: i32) -> (i32, i32) {
    %c0_i32 = arith.constant 0 : i32
    %c0_i32_0 = arith.constant 0 : i32
    return %arg0, %c0_i32 : i32, i32
  }
}

</mosaic_0001>

<bundles_post_ra>
// kernel: tpu_custom_call.1
= control target key start
LH: loop header
LB: loop body
LE: loop exit
PB: predicated region body
PF: predicated region fallthrough
CT: control target
= control target key end

     0   :  { %s436_s0 = inlined_call_operand.vmem [shape: bf16[16,32], index: 0, kind: input, shape index: {}]   ;;  %s437_s1 = inlined_call_operand.vmem [shape: bf16[32,64], index: 1, kind: input, shape index: {}]   ;;  %s438_s2 = inlined_call_operand.vmem [shape: f32[1,64], index: 2, kind: input, shape index: {}]   ;;  %s439_s3 = inlined_call_operand.vmem [shape: bf16[64,36], index: 3, kind: input, shape index: {}]   ;;  %s440_s4 = inlined_call_operand.vmem [shape: f32[1,36], index: 4, kind: input, shape index: {}]   ;;  %s441_s5 = inlined_call_operand.vmem [shape: f32[1,32], index: 5, kind: input, shape index: {}]   ;;  %s442_s6 = inlined_call_operand.<no memory space> [shape: f32[1,1], index: 6, kind: input, shape index: {}]   ;;  %s443_s7 = inlined_call_operand.hbm [shape: f32[16,128], index: 7, kind: output, shape index: {}]  }
   0x1   :  { %v12_v0 = vstv %s442_s6 }
   0x2   :  { %13 = vst [vmem:[#allocation2] sm:$0x1] %v12_v0 }
   0x3   :  { %v309_v1 = vld [vmem:[%s437_s1] sm:$0xff]   ;;  %v340_v2 = vmov 0.0   ;;  %v310_v3 = vld [vmem:[%s437_s1 + $0x8] sm:$0xff]   ;;  %vm341_vm0 = vmmov 0   ;;  %vm60_vm1 = vcmask 261120  }
   0x4   :  { %281 = vmatprep.subr.bf16.mxu0 %v340_v2  ;;  %289 = vmatprep.subr.bf16.mxu1 %v340_v2  ;;  %v312_v4 = vld [vmem:[%s439_s3] sm:$0xff]   ;;  %v313_v6 = vld [vmem:[%s439_s3 + $0x8] sm:$0xff]  }
   0x5   :  { %282 = vmatpush3.bf16.msra.mxu0 %v309_v1  ;;  %285 = vmatprep.mubr.msk.bf16.mxu0 %vm341_vm0, %v340_v2  ;;  %v311_v5 = vld [vmem:[%s436_s0] sm:$0xff]  }
   0x6   :  { %283 = vmatprep.subr.bf16.mxu0 %v340_v2  ;;  %297 = vmatprep.mubr.msk.bf16.mxu1 %vm341_vm0, %v340_v2 }
   0x7   :  { %290 = vmatpush3.bf16.msra.mxu1 %v312_v4 }
   0x8   :  { %291 = vmatprep.subr.bf16.mxu1 %v340_v2 }
   0x9   :  { %284 = vmatpush3.bf16.msra.mxu0 %v310_v3 }
   0xa   :  { %14 = vsyncpa [#allocation4], 0  ;;  %v314_v7 = vld [vmem:[%s439_s3 + $0x10] sm:$0xff]   ;;  %v315_v8 = vld [vmem:[%s439_s3 + $0x18] sm:$0xff]   ;;  %s342_s16 = smov 4   ;;  %vm147_vm2 = vcmask 523264  }
   0xb   :  { %292 = vmatpush3.bf16.msra.mxu1 %v313_v6  ;;  %v271_v9 = vld [vmem:[%s441_s5] ss:$0 sm:$0xff]  ;;  %vm236_vm3 = vcmask 7168   ;;  %vm239_vm4 = vcmask 39936   ;;  %s345_s5 = smov [#allocation3]  }
   0xc   :  { %286 = vmatmul.mubr.msk.bf16.vlgmr.msra.gmra.mrb[0].mxu0 %vm60_vm1, %v311_v5  ;;  %293 = vmatprep.subr.bf16.mxu1 %v340_v2  ;;  %v260_v10 = vld [vmem:[%s438_s2] ss:$0 sm:$0xff]  ;;  %s343_s2 = smov 124   ;;  %s249_s20 = sshll.u32 %s345_s5, 4  ;;  %s250_s20 = int_to_ptr.vmem [resolvable:$true] %s249_s20 }
   0xd   :  { %200 = vrot.lane.b32.xlu0 %v271_v9, %s342_s16  ;;  %v265_v20 = vld [vmem:[%s440_s4] ss:$0 sm:$0xff]  ;;  %s344_s4 = smov 1   ;;  %s316_s21 = scalar_lea.vmem %s250_s20, 256 }
   0xe   :  { %v272_v37 = vld [vmem:[#allocation2] ss:$0 sm:$0xff]  ;;  %p317_p0 = scmp.ne.s32.totalorder %s250_s20, %s316_s21  ;;  %p321_p1 = scmp.lt.s32.totalorder %s250_s20, %s250_s20 }
   0xf   :  { %294 = vmatpush3.bf16.msra.mxu1 %v314_v7  ;;  %p322_p2 = scmp.lt.s32.totalorder %s316_s21, %s316_s21 }
  0x10   :  { %295 = vmatprep.subr.bf16.mxu1 %v340_v2 }
  0x11   :  { %p323_p3 = por %p322_p2, %p321_p1 }
  0x13   :  { %296 = vmatpush3.bf16.msra.mxu1 %v315_v8  ;;  %p324_p4 = pnand %p323_p3, %p317_p0 }
  0x7f   :  { %v201_v25 = vpop.permute.xlu0 %200 }
  0xdf   :  { %v98_v11 = vpop.f32.mrb[0].mxu0 }
  0xe0   :  { %v99_v12 = vadd.f32 %v260_v10, %v98_v11  ;;  %v287_v13 = vpop.f32.mrb[1].mxu0 }
  0xe1   :  { %v101_v14 = vpop.f32.mrb[2].mxu0 }
  0xe2   :  { %v102_v15 = vadd.f32 %v260_v10, %v101_v14  ;;  %v288_v16 = vpop.f32.mrb[3].mxu0  ;;  %v105_v17 = vmax.f32 %v99_v12, 0.0 }
  0xe4   :  { %v106_v18 = vmax.f32 %v102_v15, 0.0 }
  0xe6   :  { %v107_v19 = vpack.c.bf16 %v106_v18, %v105_v17 }
  0xe8   :  { %298 = vmatmul.mubr.msk.bf16.vlgmr.msra.gmra.mrb[0].mxu1 %vm147_vm2, %v107_v19 }
 0x1bb   :  { %v185_v21 = vpop.f32.mrb[0].mxu1 }
 0x1bc   :  { %v186_v22 = vadd.f32 %v265_v20, %v185_v21  ;;  %v299_v23 = vpop.f32.mrb[1].mxu1 }
 0x1bd   :  { %v188_v24 = vpop.f32.mrb[2].mxu1 }
 0x1be   :  { %v192_v26 = vmax.f32 %v186_v22, 0.0  ;;  %v189_v27 = vadd.f32 %v265_v20, %v188_v24  ;;  %v300_v28 = vpop.f32.mrb[3].mxu1 }
 0x1c0   :  { %v193_v29 = vmax.f32 %v189_v27, 0.0  ;;  %v203_v30 = vmul.f32 %v201_v25, %v192_v26 }
 0x1c2   :  { %207 = vrot.lane.b32.xlu0 %v203_v30, %s343_s2  ;;  %v204_v31 = vmul.f32 %v201_v25, %v193_v29 }
 0x1c4   :  { %209 = vrot.lane.b32.xlu1 %v204_v31, %s343_s2 }
 0x234   :  { %v208_v32 = vpop.permute.xlu0 %207 }
 0x235   :  { %v213_v33 = vsel %vm60_vm1, %v208_v32, 0.0 }
 0x236   :  { %214 = vadd.xlane.f32.xlu1 %v213_v33  ;;  %v210_v34 = vpop.permute.xlu1 %209 }
 0x237   :  { %v216_v35 = vsel %vm60_vm1, %v210_v34, 0.0 }
 0x238   :  { %217 = vadd.xlane.f32.xlu0 %v216_v35 }
 0x247   :  { %232 = vrot.lane.b32.xlu1 %v189_v27, %s344_s4 }
 0x24e   :  { %230 = vrot.lane.b32.xlu0 %v186_v22, %s344_s4 }
 0x2c3   :  { %v215_v36 = vpop.xlane.xlu1 %214 }
 0x2c4   :  { %v226_v41 = vadd.f32 %v272_v37, %v215_v36 }
 0x2c5   :  { %v218_v38 = vpop.xlane.xlu0 %217 }
 0x2c6   :  { %v227_v39 = vadd.f32 %v272_v37, %v218_v38 }
 0x2c7   :  { %v233_v40 = vpop.permute.xlu1 %232 }
 0x2c8   :  { %v238_v42 = vsel %vm236_vm3, %v227_v39, %v233_v40 }
 0x2c9   :  { %v241_v43 = vsel %vm239_vm4, %v238_v42, 0.0  ;;  %v231_v44 = vpop.permute.xlu0 %230 }
 0x2ca   :  { %243 = vst [vmem:[#allocation3 + $0x8] sm:$0xff] %v241_v43  ;;  %v237_v45 = vsel %vm236_vm3, %v226_v41, %v231_v44 }
 0x2cb   :  { %v240_v46 = vsel %vm239_vm4, %v237_v45, 0.0 }
 0x2cc   :  { %242 = vst [vmem:[#allocation3] sm:$0xff] %v240_v46 }
 0x2cd   :  { %327 = shalt.err (!%p324_p4)
}
 0x2ce   :  { %s328_s24 = scalar_lea.hbm %s443_s7, 256 }
 0x2cf   :  { %p329_p5 = scmp.ne.s32.totalorder %s443_s7, %s328_s24  ;;  %p332_p6 = scmp.lt.u32.totalorder %s328_s24, %s443_s7 }
 0x2d1   :  { %p334_p7 = pnand %p332_p6, %p329_p5 }
 0x2d3   :  { %337 = shalt.err (!%p334_p7)
}
 0x2d4   :  { %s346_s29 = smov 128   ;;  %s347_s30 = smov 8  }
 0x2d5   :  { %255 = dma.vmem_to_hbm [thread:$0]  %s250_s20, 256, %s443_s7, [#allocation4], %s346_s29, %s346_s29, %s347_s30  }
 0x2d6   :  { %338 = dma.done.wait [#allocation4], 256  }
 0x2d7   :  { %339 = vsyncadd [#allocation4], 4294967040 }
 0x2d8   :  { %259 = vsyncpa [#allocation4], 1 }

</bundles_post_ra>
